<compile_context>
chip_gen: v6e
topology: v6e:2x2x1
jax: 0.10.0
libtpu: 0.0.40
codegen_flags: <defaults>
</compile_context>

<pallas_src>
import jax
import jax.numpy as jnp
from jax import lax
from jax.experimental import pallas as pl
from jax.experimental.pallas import tpu as pltpu

# ---------------- config (small, consistent with the module) -----------------
B = 2            # batch
S = 8            # max_seq_length
H = 32           # config.hidden_size
C = 8            # config.qa_conv_out_channel
PAD = 2          # max offset needed (kernel_size=5 -> pad=2)
KTAPS = 5        # taps of the stacked conv weight (offsets -2..+2)
OUT_PAD = 128    # lane-dense classifier/output width


def qa_conv_head_kernel(x_ref, w_ref, b_ref, wcb_ref, out_ref):
    """Single invocation over the whole (tiny) problem.

    x_ref   : (B*S, H)             input rows, batch-major (row r = b*S + s)
    w_ref   : (KTAPS, H, 3C)       tap-stacked conv weights (k=1/3/5 folded in)
    b_ref   : (1, 3C)              packed conv biases [b1 | b3 | b5]
    wcb_ref : (3C + 1, OUT_PAD)    classifier weight (rows 0:3C) + bias (row 3C),
                                   zero-padded to 128 lanes
    out_ref : (B, S, OUT_PAD)      lane-dense logits (lanes 0:2 are real)
    """
    xf = x_ref[...]                                         # (B*S, H)

    # Per-row sequence position (for conv boundary masks), shape (B*S, 1).
    row = lax.broadcasted_iota(jnp.int32, (B * S, 1), 0)
    s_idx = row % S

    def tap_operand(d):
        """Rows shifted so row r holds x[r + d]; zero where s + d leaves [0, S).

        The mask also kills any cross-batch bleed from the shift, so the
        result exactly matches zero-padded per-batch convolution.
        """
        if d == 0:
            return xf
        if d > 0:
            sh = jnp.concatenate(
                [xf[d:, :], jnp.zeros((d, H), xf.dtype)], axis=0)
            valid = s_idx < (S - d)
        else:
            sh = jnp.concatenate(
                [jnp.zeros((-d, H), xf.dtype), xf[:B * S + d, :]], axis=0)
            valid = s_idx >= (-d)
        return jnp.where(valid, sh, 0.0)

    # One small MXU dot per tap of the stacked weight; balanced-tree sum so
    # the dots issue independently (no serial MRF pop+add chain on v5e/v6e).
    p = [jnp.dot(tap_operand(t - PAD), w_ref[t],
                 preferred_element_type=jnp.float32)
         for t in range(KTAPS)]
    conv = ((p[0] + p[1]) + (p[2] + p[3])) + p[4]           # (B*S, 3C)
    act = jnp.maximum(conv + b_ref[...], 0.0)               # bias + ReLU

    # Classifier (padded to 128 lanes -> single lane-dense output store).
    wc = wcb_ref[0:3 * C, :]                                # (3C, OUT_PAD)
    bc = wcb_ref[3 * C:3 * C + 1, :]                        # (1, OUT_PAD)
    logits = jnp.dot(act, wc, preferred_element_type=jnp.float32) + bc

    out_ref[...] = logits.reshape(B, S, OUT_PAD).astype(out_ref.dtype)


def pack_qa_conv_head_params(params):
    """One-time parameter packing (call at init, NOT per forward)."""
    (w1, b1, w3, b3, w5, b5, wc, bc) = params
    # Tap-stacked conv weight: channels [0:C]=conv1, [C:2C]=conv3, [2C:3C]=conv5.
    W_all = jnp.zeros((KTAPS, H, 3 * C), jnp.float32)
    W_all = W_all.at[2, :, 0:C].set(w1[0])           # k=1: center tap only
    W_all = W_all.at[1:4, :, C:2 * C].set(w3)        # k=3: taps at offsets -1..1
    W_all = W_all.at[:, :, 2 * C:3 * C].set(w5)      # k=5: all 5 taps
    b_all = jnp.concatenate([b1, b3, b5], axis=-1)   # (1, 3C)
    # Classifier weight + bias packed and zero-padded to 128 output lanes.
    wcb = jnp.concatenate([wc, bc], axis=0)          # (3C + 1, 2)
    wcb = jnp.pad(wcb, ((0, 0), (0, OUT_PAD - wcb.shape[1])))
    return (W_all, b_all, wcb)


@jax.jit
def qa_conv_head(x, packed_params):
    """x: (B, S, H) float32, packed_params from pack_qa_conv_head_params.

    Returns logits (B, S, 2).
    """
    W_all, b_all, wcb = packed_params
    x2d = x.reshape(B * S, H)  # metadata-only reshape (batch-major rows)

    out = pl.pallas_call(
        qa_conv_head_kernel,
        out_shape=jax.ShapeDtypeStruct((B, S, OUT_PAD), jnp.float32),
        grid_spec=pltpu.PrefetchScalarGridSpec(
            num_scalar_prefetch=0,
            grid=(1,),  # single step: whole problem in one invocation
            in_specs=[
                pl.BlockSpec((B * S, H), lambda i: (0, 0)),            # x
                pl.BlockSpec((KTAPS, H, 3 * C), lambda i: (0, 0, 0)),  # W_all
                pl.BlockSpec((1, 3 * C), lambda i: (0, 0)),            # b_all
                pl.BlockSpec((3 * C + 1, OUT_PAD), lambda i: (0, 0)),  # wcb
            ],
            out_specs=pl.BlockSpec((B, S, OUT_PAD), lambda i: (0, 0, 0)),
        ),
        compiler_params=pltpu.CompilerParams(
            dimension_semantics=("arbitrary",)),
    )(x2d, W_all, b_all, wcb)

    # Only a single slice remains downstream (fused under jit).
    return out[..., :2]


def reference(x, params):
    """Pure-JAX reference of QAConvHead.forward (eval mode)."""
    (w1, b1, w3, b3, w5, b5, wc, bc) = params
    xp = jnp.pad(x, ((0, 0), (PAD, PAD), (0, 0)))

    def conv(w_taps, bias, ksz):
        pad = (ksz - 1) // 2
        acc = jnp.zeros((B, S, C), jnp.float32)
        for t in range(ksz):
            off = PAD - pad + t
            acc = acc + jnp.einsum('bsh,hc->bsc', xp[:, off:off + S, :],
                                   w_taps[t])
        return jax.nn.relu(acc + bias)

    c1 = conv(w1, b1, 1)
    c3 = conv(w3, b3, 3)
    c5 = conv(w5, b5, 5)
    concat = jnp.concatenate([c1, c3, c5], axis=-1)
    return jnp.einsum('bsk,kt->bst', concat, wc) + bc


def init_params(key):
    ks = jax.random.split(key, 8)
    scale = 0.05
    w1 = scale * jax.random.normal(ks[0], (1, H, C), jnp.float32)
    b1 = scale * jax.random.normal(ks[1], (1, C), jnp.float32)
    w3 = scale * jax.random.normal(ks[2], (3, H, C), jnp.float32)
    b3 = scale * jax.random.normal(ks[3], (1, C), jnp.float32)
    w5 = scale * jax.random.normal(ks[4], (5, H, C), jnp.float32)
    b5 = scale * jax.random.normal(ks[5], (1, C), jnp.float32)
    wc = scale * jax.random.normal(ks[6], (3 * C, 2), jnp.float32)
    bc = scale * jax.random.normal(ks[7], (1, 2), jnp.float32)
    return (w1, b1, w3, b3, w5, b5, wc, bc)


if __name__ == "__main__":
    key = jax.random.PRNGKey(0)
    kx, kp = jax.random.split(key)
    x = jax.random.normal(kx, (B, S, H), jnp.float32)
    params = init_params(kp)

    # One-time packing (init-time), NOT part of the per-call forward path.
    packed = jax.tree_util.tree_map(jax.block_until_ready,
                                    pack_qa_conv_head_params(params))

    out = qa_conv_head(x, packed)
    out = jax.block_until_ready(out)

    ref = reference(x, params)
    assert out.shape == (B, S, 2)
    assert jnp.allclose(out, ref, atol=2e-4, rtol=2e-4), "mismatch vs reference"
    print("KERNEL_OK")
</pallas_src>

<mosaic_0001>
module attributes {stable_mosaic.version = 11 : i64} {
  func.func @qa_conv_head_kernel(%arg0: i32, %arg1: memref<16x32xf32, #tpu.memory_space<vmem>>, %arg2: memref<5x32x24xf32, #tpu.memory_space<vmem>>, %arg3: memref<1x24xf32, #tpu.memory_space<vmem>>, %arg4: memref<25x128xf32, #tpu.memory_space<vmem>>, %arg5: memref<2x8x128xf32, #tpu.memory_space<vmem>>) attributes {dimension_semantics = [#tpu.dimension_semantics<arbitrary>], iteration_bounds = array<i64: 1>, scalar_prefetch = 0 : i64, scratch_operands = 0 : i64, tpu.core_type = #tpu.core_type<tc>, window_params = [{pipeline_mode = #tpu.pipeline_mode<synchronous>, transform_indices = @transform_0, window_bounds = array<i64: 16, 32>}, {pipeline_mode = #tpu.pipeline_mode<synchronous>, transform_indices = @transform_1, window_bounds = array<i64: 5, 32, 24>}, {pipeline_mode = #tpu.pipeline_mode<synchronous>, transform_indices = @transform_2, window_bounds = array<i64: 1, 24>}, {pipeline_mode = #tpu.pipeline_mode<synchronous>, transform_indices = @transform_3, window_bounds = array<i64: 25, 128>}, {pipeline_mode = #tpu.pipeline_mode<synchronous>, transform_indices = @transform_4, window_bounds = array<i64: 2, 8, 128>}]} {
    %c0 = arith.constant 0 : index
    %c0_0 = arith.constant 0 : index
    %0 = vector.load %arg1[%c0, %c0_0] : memref<16x32xf32, #tpu.memory_space<vmem>>, vector<16x32xf32>
    %1 = tpu.iota {dimensions = array<i32: 0>} : vector<16x1xi32>
    %c8_i32 = arith.constant 8 : i32
    %c0_i32 = arith.constant 0 : i32
    %2 = arith.cmpi eq, %c8_i32, %c0_i32 : i32
    %c1_i32 = arith.constant 1 : i32
    %3 = arith.select %2, %c1_i32, %c8_i32 : i32
    %4 = vector.broadcast %3 : i32 to vector<16x1xi32>
    %5 = arith.remsi %1, %4 : vector<16x1xi32>
    %c0_i32_1 = arith.constant 0 : i32
    %6 = vector.broadcast %c0_i32_1 : i32 to vector<16x1xi32>
    %7 = arith.cmpi ne, %5, %6 : vector<16x1xi32>
    %c0_i32_2 = arith.constant 0 : i32
    %8 = vector.broadcast %c0_i32_2 : i32 to vector<16x1xi32>
    %9 = arith.cmpi slt, %5, %8 : vector<16x1xi32>
    %c0_i32_3 = arith.constant 0 : i32
    %10 = arith.cmpi slt, %3, %c0_i32_3 : i32
    %11 = vector.broadcast %10 : i1 to vector<16x1xi1>
    %12 = vector.broadcast %11 : vector<16x1xi1> to vector<16x1xi1>
    %13 = arith.xori %9, %12 : vector<16x1xi1>
    %14 = arith.andi %13, %7 : vector<16x1xi1>
    %15 = vector.broadcast %3 : i32 to vector<16x1xi32>
    %16 = arith.addi %5, %15 : vector<16x1xi32>
    %17 = arith.select %14, %16, %5 : vector<16x1xi1>, vector<16x1xi32>
    %cst = arith.constant 0.000000e+00 : f32
    %18 = vector.broadcast %cst : f32 to vector<2x32xf32>
    %19 = vector.extract_strided_slice %0 {offsets = [0, 0], sizes = [14, 32], strides = [1, 1]} : vector<16x32xf32> to vector<14x32xf32>
    %20 = tpu.concatenate %18, %19 in 0 : vector<2x32xf32>, vector<14x32xf32> -> vector<16x32xf32>
    %c2_i32 = arith.constant 2 : i32
    %21 = vector.broadcast %c2_i32 : i32 to vector<16x1xi32>
    %22 = arith.cmpi sge, %17, %21 : vector<16x1xi32>
    %cst_4 = arith.constant 0.000000e+00 : f32
    %23 = vector.shape_cast %22 : vector<16x1xi1> to vector<16x1xi1>
    %24 = vector.broadcast %23 : vector<16x1xi1> to vector<16x32xi1>
    %25 = vector.broadcast %cst_4 : f32 to vector<16x32xf32>
    %26 = arith.select %24, %20, %25 : vector<16x32xi1>, vector<16x32xf32>
    %c0_5 = arith.constant 0 : index
    %c0_6 = arith.constant 0 : index
    %c0_7 = arith.constant 0 : index
    %27 = vector.load %arg2[%c0_5, %c0_6, %c0_7] : memref<5x32x24xf32, #tpu.memory_space<vmem>>, vector<1x32x24xf32>
    %28 = vector.shape_cast %27 : vector<1x32x24xf32> to vector<32x24xf32>
    %cst_8 = arith.constant dense<0.000000e+00> : vector<16x24xf32>
    %29 = tpu.matmul %26, %28, %cst_8 {dimension_numbers = #tpu.dot_dimension_numbers<[1], [0], [0], [1], [0, 0, 1, 1], [], []>} : vector<16x32xf32>, vector<32x24xf32>, vector<16x24xf32> -> vector<16x24xf32>
    %cst_9 = arith.constant 0.000000e+00 : f32
    %30 = vector.broadcast %cst_9 : f32 to vector<1x32xf32>
    %31 = vector.extract_strided_slice %0 {offsets = [0, 0], sizes = [15, 32], strides = [1, 1]} : vector<16x32xf32> to vector<15x32xf32>
    %32 = tpu.concatenate %30, %31 in 0 : vector<1x32xf32>, vector<15x32xf32> -> vector<16x32xf32>
    %c1_i32_10 = arith.constant 1 : i32
    %33 = vector.broadcast %c1_i32_10 : i32 to vector<16x1xi32>
    %34 = arith.cmpi sge, %17, %33 : vector<16x1xi32>
    %cst_11 = arith.constant 0.000000e+00 : f32
    %35 = vector.shape_cast %34 : vector<16x1xi1> to vector<16x1xi1>
    %36 = vector.broadcast %35 : vector<16x1xi1> to vector<16x32xi1>
    %37 = vector.broadcast %cst_11 : f32 to vector<16x32xf32>
    %38 = arith.select %36, %32, %37 : vector<16x32xi1>, vector<16x32xf32>
    %c1 = arith.constant 1 : index
    %c0_12 = arith.constant 0 : index
    %c0_13 = arith.constant 0 : index
    %39 = vector.load %arg2[%c1, %c0_12, %c0_13] : memref<5x32x24xf32, #tpu.memory_space<vmem>>, vector<1x32x24xf32>
    %40 = vector.shape_cast %39 : vector<1x32x24xf32> to vector<32x24xf32>
    %cst_14 = arith.constant dense<0.000000e+00> : vector<16x24xf32>
    %41 = tpu.matmul %38, %40, %cst_14 {dimension_numbers = #tpu.dot_dimension_numbers<[1], [0], [0], [1], [0, 0, 1, 1], [], []>} : vector<16x32xf32>, vector<32x24xf32>, vector<16x24xf32> -> vector<16x24xf32>
    %c2 = arith.constant 2 : index
    %c0_15 = arith.constant 0 : index
    %c0_16 = arith.constant 0 : index
    %42 = vector.load %arg2[%c2, %c0_15, %c0_16] : memref<5x32x24xf32, #tpu.memory_space<vmem>>, vector<1x32x24xf32>
    %43 = vector.shape_cast %42 : vector<1x32x24xf32> to vector<32x24xf32>
    %cst_17 = arith.constant dense<0.000000e+00> : vector<16x24xf32>
    %44 = tpu.matmul %0, %43, %cst_17 {dimension_numbers = #tpu.dot_dimension_numbers<[1], [0], [0], [1], [0, 0, 1, 1], [], []>} : vector<16x32xf32>, vector<32x24xf32>, vector<16x24xf32> -> vector<16x24xf32>
    %45 = vector.extract_strided_slice %0 {offsets = [1, 0], sizes = [15, 32], strides = [1, 1]} : vector<16x32xf32> to vector<15x32xf32>
    %cst_18 = arith.constant 0.000000e+00 : f32
    %46 = vector.broadcast %cst_18 : f32 to vector<1x32xf32>
    %47 = tpu.concatenate %45, %46 in 0 : vector<15x32xf32>, vector<1x32xf32> -> vector<16x32xf32>
    %c7_i32 = arith.constant 7 : i32
    %48 = vector.broadcast %c7_i32 : i32 to vector<16x1xi32>
    %49 = arith.cmpi slt, %17, %48 : vector<16x1xi32>
    %cst_19 = arith.constant 0.000000e+00 : f32
    %50 = vector.shape_cast %49 : vector<16x1xi1> to vector<16x1xi1>
    %51 = vector.broadcast %50 : vector<16x1xi1> to vector<16x32xi1>
    %52 = vector.broadcast %cst_19 : f32 to vector<16x32xf32>
    %53 = arith.select %51, %47, %52 : vector<16x32xi1>, vector<16x32xf32>
    %c3 = arith.constant 3 : index
    %c0_20 = arith.constant 0 : index
    %c0_21 = arith.constant 0 : index
    %54 = vector.load %arg2[%c3, %c0_20, %c0_21] : memref<5x32x24xf32, #tpu.memory_space<vmem>>, vector<1x32x24xf32>
    %55 = vector.shape_cast %54 : vector<1x32x24xf32> to vector<32x24xf32>
    %cst_22 = arith.constant dense<0.000000e+00> : vector<16x24xf32>
    %56 = tpu.matmul %53, %55, %cst_22 {dimension_numbers = #tpu.dot_dimension_numbers<[1], [0], [0], [1], [0, 0, 1, 1], [], []>} : vector<16x32xf32>, vector<32x24xf32>, vector<16x24xf32> -> vector<16x24xf32>
    %57 = vector.extract_strided_slice %0 {offsets = [2, 0], sizes = [14, 32], strides = [1, 1]} : vector<16x32xf32> to vector<14x32xf32>
    %cst_23 = arith.constant 0.000000e+00 : f32
    %58 = vector.broadcast %cst_23 : f32 to vector<2x32xf32>
    %59 = tpu.concatenate %57, %58 in 0 : vector<14x32xf32>, vector<2x32xf32> -> vector<16x32xf32>
    %c6_i32 = arith.constant 6 : i32
    %60 = vector.broadcast %c6_i32 : i32 to vector<16x1xi32>
    %61 = arith.cmpi slt, %17, %60 : vector<16x1xi32>
    %cst_24 = arith.constant 0.000000e+00 : f32
    %62 = vector.shape_cast %61 : vector<16x1xi1> to vector<16x1xi1>
    %63 = vector.broadcast %62 : vector<16x1xi1> to vector<16x32xi1>
    %64 = vector.broadcast %cst_24 : f32 to vector<16x32xf32>
    %65 = arith.select %63, %59, %64 : vector<16x32xi1>, vector<16x32xf32>
    %c4 = arith.constant 4 : index
    %c0_25 = arith.constant 0 : index
    %c0_26 = arith.constant 0 : index
    %66 = vector.load %arg2[%c4, %c0_25, %c0_26] : memref<5x32x24xf32, #tpu.memory_space<vmem>>, vector<1x32x24xf32>
    %67 = vector.shape_cast %66 : vector<1x32x24xf32> to vector<32x24xf32>
    %cst_27 = arith.constant dense<0.000000e+00> : vector<16x24xf32>
    %68 = tpu.matmul %65, %67, %cst_27 {dimension_numbers = #tpu.dot_dimension_numbers<[1], [0], [0], [1], [0, 0, 1, 1], [], []>} : vector<16x32xf32>, vector<32x24xf32>, vector<16x24xf32> -> vector<16x24xf32>
    %69 = arith.addf %29, %41 : vector<16x24xf32>
    %70 = arith.addf %44, %56 : vector<16x24xf32>
    %71 = arith.addf %69, %70 : vector<16x24xf32>
    %72 = arith.addf %71, %68 : vector<16x24xf32>
    %c0_28 = arith.constant 0 : index
    %c0_29 = arith.constant 0 : index
    %73 = vector.load %arg3[%c0_28, %c0_29] : memref<1x24xf32, #tpu.memory_space<vmem>>, vector<1x24xf32>
    %74 = vector.broadcast %73 : vector<1x24xf32> to vector<16x24xf32>
    %75 = arith.addf %72, %74 : vector<16x24xf32>
    %cst_30 = arith.constant 0.000000e+00 : f32
    %76 = vector.broadcast %cst_30 : f32 to vector<16x24xf32>
    %77 = arith.maximumf %75, %76 : vector<16x24xf32>
    %c0_31 = arith.constant 0 : index
    %c0_32 = arith.constant 0 : index
    %78 = vector.load %arg4[%c0_31, %c0_32] : memref<25x128xf32, #tpu.memory_space<vmem>>, vector<24x128xf32>
    %c24 = arith.constant 24 : index
    %c0_33 = arith.constant 0 : index
    %79 = vector.load %arg4[%c24, %c0_33] : memref<25x128xf32, #tpu.memory_space<vmem>>, vector<1x128xf32>
    %cst_34 = arith.constant dense<0.000000e+00> : vector<16x128xf32>
    %80 = tpu.matmul %77, %78, %cst_34 {dimension_numbers = #tpu.dot_dimension_numbers<[1], [0], [0], [1], [0, 0, 1, 1], [], []>} : vector<16x24xf32>, vector<24x128xf32>, vector<16x128xf32> -> vector<16x128xf32>
    %81 = vector.broadcast %79 : vector<1x128xf32> to vector<16x128xf32>
    %82 = arith.addf %80, %81 : vector<16x128xf32>
    %83 = vector.shape_cast %82 : vector<16x128xf32> to vector<2x8x128xf32>
    %c0_35 = arith.constant 0 : index
    %c0_36 = arith.constant 0 : index
    %c0_37 = arith.constant 0 : index
    %84 = vector.load %arg5[%c0_35, %c0_36, %c0_37] : memref<2x8x128xf32, #tpu.memory_space<vmem>>, vector<2x8x128xf32>
    tpu.vector_store %arg5[%c0_35, %c0_36, %c0_37], %83 {strides = array<i32>} : memref<2x8x128xf32, #tpu.memory_space<vmem>>, vector<2x8x128xf32>,
    return
  }
  func.func @transform_0(%arg0: i32) -> (i32, i32) {
    %c0_i32 = arith.constant 0 : i32
    %c0_i32_0 = arith.constant 0 : i32
    %c0_i32_1 = arith.constant 0 : i32
    return %c0_i32, %c0_i32_0 : i32, i32
  }
  func.func @transform_1(%arg0: i32) -> (i32, i32, i32) {
    %c0_i32 = arith.constant 0 : i32
    %c0_i32_0 = arith.constant 0 : i32
    %c0_i32_1 = arith.constant 0 : i32
    %c0_i32_2 = arith.constant 0 : i32
    return %c0_i32, %c0_i32_0, %c0_i32_1 : i32, i32, i32
  }
  func.func @transform_2(%arg0: i32) -> (i32, i32) {
    %c0_i32 = arith.constant 0 : i32
    %c0_i32_0 = arith.constant 0 : i32
    %c0_i32_1 = arith.constant 0 : i32
    return %c0_i32, %c0_i32_0 : i32, i32
  }
  func.func @transform_3(%arg0: i32) -> (i32, i32) {
    %c0_i32 = arith.constant 0 : i32
    %c0_i32_0 = arith.constant 0 : i32
    %c0_i32_1 = arith.constant 0 : i32
    return %c0_i32, %c0_i32_0 : i32, i32
  }
  func.func @transform_4(%arg0: i32) -> (i32, i32, i32) {
    %c0_i32 = arith.constant 0 : i32
    %c0_i32_0 = arith.constant 0 : i32
    %c0_i32_1 = arith.constant 0 : i32
    %c0_i32_2 = arith.constant 0 : i32
    return %c0_i32, %c0_i32_0, %c0_i32_1 : i32, i32, i32
  }
}

</mosaic_0001>

<bundles_post_ra>
// kernel: qa_conv_head.1
= control target key start
LH: loop header
LB: loop body
LE: loop exit
PB: predicated region body
PF: predicated region fallthrough
CT: control target
= control target key end

     0   :  { %v19_v0 = vlaneseq  ;;  %vm67_vm0 = vcmask 1040384   ;;  %vm174_vm1 = vcmask 1046528   ;;  %vm87_vm2 = vcmask 261120   ;;  %s926_s1 = inlined_call_operand.vmem [shape: f32[5,32,24], index: 1, kind: input, shape index: {}]   ;;  %s927_s0 = inlined_call_operand.vmem [shape: f32[16,32], index: 0, kind: input, shape index: {}]   ;;  %s928_s3 = inlined_call_operand.vmem [shape: f32[25,128], index: 3, kind: input, shape index: {}]   ;;  %s929_s2 = inlined_call_operand.vmem [shape: f32[1,24], index: 2, kind: input, shape index: {}]   ;;  %s930_s4 = inlined_call_operand.vmem [shape: f32[2,8,128], index: 4, kind: output, shape index: {}]  }
   0x1   :  { %v650_v1 = vld [vmem:[%s926_s1 + $0x38] sm:$0xff]  ;;  %v649_v3 = vld [vmem:[%s926_s1 + $0x30] sm:$0xff]  ;;  %v648_v6 = vld [vmem:[%s926_s1 + $0x28] sm:$0xff]  ;;  %vm275_vm7 = vcmask 1045504   ;;  %vm48_vm8 = vcmask 1041408   ;;  %vm559_vm13 = vcmask 195584  }
   0x2   :  { %v660_v2 = vld [vmem:[%s926_s1 + $0x78] sm:$0xff]  ;;  %712 = vmatprep.subr.mxu0 %v650_v1  ;;  %v659_v4 = vld [vmem:[%s926_s1 + $0x70] sm:$0xff]  ;;  %v20_v5 = vshrl.u32 %v19_v0, 7  ;;  %v658_v7 = vld [vmem:[%s926_s1 + $0x68] sm:$0xff] }
   0x3   :  { %723 = vmatprep.subr.mxu1 %v660_v2  ;;  %713 = vmatpush3.msra.mxu0 %v650_v1  ;;  %v822_v8 = vld [vmem:[%s927_s0] sm:$0xff]  ;;  %v827_v9 = vld [vmem:[%s927_s0 + $0x8] sm:$0xff]  ;;  %v666_v25 = vld [vmem:[%s926_s1 + $0x98] sm:$0xff] }
   0x4   :  { %724 = vmatpush3.msra.mxu1 %v660_v2  ;;  %714 = vmatprep.subr.mxu0 %v649_v3  ;;  %v829_v10 = vand.u32 7, %v20_v5  ;;  %v68_v11 = vrot.slane %v822_v8, 7  ;;  %v21_v12 = vadd.s32 8, %v20_v5  ;;  %v175_v13 = vrot.slane %v822_v8, 1  ;;  %v647_v14 = vld [vmem:[%s926_s1 + $0x20] sm:$0xff]  ;;  %v66_v27 = vld [vmem:[%s926_s1 + $0x18] sm:$0xff] }
   0x5   :  { %725 = vmatprep.subr.mxu1 %v659_v4  ;;  %715 = vmatpush3.msra.mxu0 %v649_v3  ;;  %v657_v15 = vld [vmem:[%s926_s1 + $0x60] sm:$0xff]  ;;  %v69_v16 = vrot.slane %v827_v9, 7  ;;  %v176_v17 = vrot.slane %v827_v9, 1  ;;  %v276_v29 = vrot.slane %v822_v8, 2  ;;  %v277_v30 = vrot.slane %v827_v9, 2  ;;  %v665_v32 = vld [vmem:[%s926_s1 + $0x90] sm:$0xff] }
   0x6   :  { %726 = vmatpush3.msra.mxu1 %v659_v4  ;;  %716 = vmatprep.subr.mxu0 %v648_v6  ;;  %v73_v18 = vsel %vm67_vm0, 0.0, %v68_v11  ;;  %vm74_vm3 = vcmp.ge.s32.totalorder %v829_v10, 1  ;;  %v33_v19 = vand.u32 7, %v21_v12  ;;  %vm181_vm4 = vcmp.lt.s32.totalorder %v829_v10, 7  ;;  %v65_v33 = vld [vmem:[%s926_s1 + $0x10] sm:$0xff]  ;;  %v664_v35 = vld [vmem:[%s926_s1 + $0x88] sm:$0xff] }
   0x7   :  { %727 = vmatprep.subr.mxu1 %v658_v7  ;;  %717 = vmatpush3.msra.mxu0 %v648_v6  ;;  %v80_v20 = vsel %vm74_vm3, %v73_v18, 0.0  ;;  %v70_v21 = vsel %vm67_vm0, %v68_v11, %v69_v16  ;;  %v177_v22 = vsel %vm174_vm1, %v175_v13, %v176_v17  ;;  %v180_v23 = vsel %vm174_vm1, %v176_v17, 0.0  ;;  %v64_v36 = vld [vmem:[%s926_s1 + $0x8] sm:$0xff]  ;;  %v663_v39 = vld [vmem:[%s926_s1 + $0x80] sm:$0xff]  ;;  %v656_v47 = vld [vmem:[%s926_s1 + $0x58] sm:$0xff] }
   0x8   :  { %728 = vmatpush3.msra.mxu1 %v658_v7  ;;  %718 = vmatprep.subr.mxu0 %v647_v14  ;;  %vm75_vm5 = vcmp.ge.s32.totalorder %v33_v19, 1  ;;  %v187_v24 = vsel %vm181_vm4, %v177_v22, 0.0  ;;  %vm182_vm6 = vcmp.lt.s32.totalorder %v33_v19, 7  ;;  %v49_v31 = vrot.slane %v822_v8, 6  ;;  %v63_v40 = vld [vmem:[%s926_s1] sm:$0xff]  ;;  %v655_v48 = vld [vmem:[%s926_s1 + $0x50] sm:$0xff] }
   0x9   :  { %729 = vmatprep.subr.mxu1 %v657_v15  ;;  %719 = vmatpush3.msra.mxu0 %v647_v14  ;;  %v81_v26 = vsel %vm75_vm5, %v70_v21, 0.0  ;;  %v188_v28 = vsel %vm182_vm6, %v180_v23, 0.0  ;;  %v50_v34 = vrot.slane %v827_v9, 6  ;;  %v278_v37 = vsel %vm275_vm7, %v276_v29, %v277_v30  ;;  %v654_v49 = vld [vmem:[%s926_s1 + $0x48] sm:$0xff]  ;;  %v653_v50 = vld [vmem:[%s926_s1 + $0x40] sm:$0xff]  ;;  %v553_v51 = vld [vmem:[%s928_s3 + $0x10] sm:$0xff] }
   0xa   :  { %720 = vmatprep.mubr.msk.f32.mxu0 %vm87_vm2, %v80_v20  ;;  %730 = vmatpush3.msra.mxu1 %v657_v15  ;;  %vm282_vm9 = vcmp.lt.s32.totalorder %v829_v10, 6  ;;  %v54_v38 = vsel %vm48_vm8, 0.0, %v49_v31  ;;  %vm55_vm10 = vcmp.ge.s32.totalorder %v829_v10, 2  ;;  %v281_v41 = vsel %vm275_vm7, %v277_v30, 0.0  ;;  %v552_v52 = vld [vmem:[%s928_s3 + $0x8] sm:$0xff]  ;;  %v551_v53 = vld [vmem:[%s928_s3] sm:$0xff] }
   0xb   :  { %721 = vmatmul.mubr.msk.f32.vlgmr.msra.gmra.mxu0 %vm87_vm2, %v81_v26  ;;  %731 = vmatprep.mubr.msk.f32.mxu1 %vm87_vm2, %v187_v24  ;;  %vm283_vm11 = vcmp.lt.s32.totalorder %v33_v19, 6  ;;  %v51_v42 = vsel %vm48_vm8, %v49_v31, %v50_v34  ;;  %vm56_vm12 = vcmp.ge.s32.totalorder %v33_v19, 2  ;;  %v288_v43 = vsel %vm282_vm9, %v278_v37, 0.0  ;;  %v673_v6 = vld [vmem:[%s929_s2] ss:$0 sm:$0xff] }
   0xc   :  { %734 = vmatprep.subr.mxu0 %v666_v25  ;;  %745 = vmatprep.subr.mxu1 %v66_v27  ;;  %v61_v44 = vsel %vm55_vm10, %v54_v38, 0.0  ;;  %v289_v45 = vsel %vm283_vm11, %v281_v41, 0.0  ;;  %v62_v46 = vsel %vm56_vm12, %v51_v42, 0.0  ;;  %v674_v13 = vld [vmem:[%s928_s3 + $0x18] ss:$0 sm:$0xff] }
   0xd   :  { %732 = vmatmul.mubr.msk.f32.vlgmr.msra.gmra.mxu1 %vm87_vm2, %v188_v28  ;;  %735 = vmatpush3.msra.mxu0 %v666_v25 }
   0xe   :  { %746 = vmatpush3.msra.mxu1 %v66_v27  ;;  %736 = vmatprep.subr.mxu0 %v665_v32 }
   0xf   :  { %747 = vmatprep.subr.mxu1 %v65_v33  ;;  %737 = vmatpush3.msra.mxu0 %v665_v32 }
  0x10   :  { %748 = vmatpush3.msra.mxu1 %v65_v33  ;;  %738 = vmatprep.subr.mxu0 %v664_v35 }
  0x11   :  { %749 = vmatprep.subr.mxu1 %v64_v36  ;;  %739 = vmatpush3.msra.mxu0 %v664_v35 }
  0x12   :  { %750 = vmatpush3.msra.mxu1 %v64_v36  ;;  %740 = vmatprep.subr.mxu0 %v663_v39 }
  0x13   :  { %751 = vmatprep.subr.mxu1 %v63_v40  ;;  %741 = vmatpush3.msra.mxu0 %v663_v39 }
  0x14   :  { %742 = vmatprep.mubr.msk.f32.mxu0 %vm87_vm2, %v288_v43  ;;  %752 = vmatpush3.msra.mxu1 %v63_v40 }
  0x15   :  { %753 = vmatprep.mubr.msk.f32.mxu1 %vm87_vm2, %v61_v44  ;;  %743 = vmatmul.mubr.msk.f32.vlgmr.msra.gmra.mxu0 %vm87_vm2, %v289_v45 }
  0x16   :  { %754 = vmatmul.mubr.msk.f32.vlgmr.msra.gmra.mxu1 %vm87_vm2, %v62_v46  ;;  %756 = vmatprep.subr.mxu0 %v656_v47 }
  0x17   :  { %764 = vmatprep.mubr.msk.f32.mxu0 %vm87_vm2, %v822_v8  ;;  %757 = vmatpush3.msra.mxu0 %v656_v47 }
  0x18   :  { %758 = vmatprep.subr.mxu0 %v655_v48  ;;  %767 = vmatprep.subr.mxu1 %v553_v51 }
  0x19   :  { %759 = vmatpush3.msra.mxu0 %v655_v48  ;;  %768 = vmatpush3.msra.mxu1 %v553_v51 }
  0x1a   :  { %760 = vmatprep.subr.mxu0 %v654_v49  ;;  %769 = vmatprep.subr.mxu1 %v552_v52 }
  0x1b   :  { %761 = vmatpush3.msra.mxu0 %v654_v49  ;;  %770 = vmatpush3.msra.mxu1 %v552_v52 }
  0x1c   :  { %762 = vmatprep.subr.mxu0 %v653_v50  ;;  %771 = vmatprep.subr.mxu1 %v551_v53 }
  0x1d   :  { %763 = vmatpush3.msra.mxu0 %v653_v50  ;;  %772 = vmatpush3.msra.mxu1 %v551_v53 }
  0x1e   :  { %765 = vmatmul.mubr.msk.f32.vlgmr.msra.gmra.mxu0 %vm87_vm2, %v827_v9 }
  0xcb   :  { %v722_v54 = vpop.f32.mrf.mxu0 }
  0xcd   :  { %v733_v55 = vpop.f32.mrf.mxu1  ;;  %v160_v56 = vpop.f32.mrf.mxu0 }
  0xcf   :  { %v266_v57 = vpop.f32.mrf.mxu1 }
  0xd5   :  { %v744_v58 = vpop.f32.mrf.mxu0 }
  0xd6   :  { %v755_v59 = vpop.f32.mrf.mxu1 }
  0xd7   :  { %v367_v60 = vpop.f32.mrf.mxu0  ;;  %v454_v63 = vadd.f32 %v755_v59, %v722_v54 }
  0xd8   :  { %v448_v61 = vpop.f32.mrf.mxu1 }
  0xd9   :  { %v449_v2 = vadd.f32 %v448_v61, %v160_v56 }
  0xde   :  { %v766_v62 = vpop.f32.mrf.mxu0 }
  0xdf   :  { %v533_v0 = vadd.f32 %v766_v62, %v733_v55 }
  0xe0   :  { %v527_v1 = vpop.f32.mrf.mxu0 }
  0xe1   :  { %v537_v3 = vadd.f32 %v533_v0, %v454_v63  ;;  %v528_v4 = vadd.f32 %v527_v1, %v266_v57 }
  0xe3   :  { %v539_v5 = vadd.f32 %v744_v58, %v537_v3  ;;  %v536_v7 = vadd.f32 %v528_v4, %v449_v2 }
  0xe5   :  { %v538_v8 = vadd.f32 %v536_v7, %v367_v60  ;;  %v548_v9 = vadd.f32 %v673_v6, %v539_v5 }
  0xe7   :  { %v547_v10 = vadd.f32 %v673_v6, %v538_v8  ;;  %v550_v12 = vmax.f32 %v548_v9, 0.0 }
  0xe9   :  { %v549_v11 = vmax.f32 %v547_v10, 0.0 }
  0xeb   :  { %773 = vmatprep.mubr.msk.f32.mxu1 %vm559_vm13, %v549_v11 }
  0xec   :  { %774 = vmatmul.mubr.msk.f32.vlgmr.msra.gmra.mxu1 %vm559_vm13, %v550_v12 }
 0x1ac   :  { %v775_v14 = vpop.f32.mrf.mxu1 }
 0x1ad   :  { %v638_v15 = vadd.f32 %v775_v14, %v674_v13 }
 0x1ae   :  { %v632_v16 = vpop.f32.mrf.mxu1 }
 0x1af   :  { %642 = vst [vmem:[%s930_s4 + $0x8] sm:$0xff] %v638_v15  ;;  %v633_v17 = vadd.f32 %v674_v13, %v632_v16 }
 0x1b1   :  { %641 = vst [vmem:[%s930_s4] sm:$0xff] %v633_v17 }

</bundles_post_ra>
